<compile_context>
chip_gen: v7x
topology: tpu7x:2x2x1
jax: 0.10.0
libtpu: 0.0.40
codegen_flags: <defaults>
</compile_context>

<pallas_src>
import functools

import jax
import jax.numpy as jnp
from jax.experimental import pallas as pl
from jax.experimental.pallas import tpu as pltpu


def _polyline_kernel(x_ref, wc_ref, bc_ref, g_ref, be_ref, o_ref, *, hidden_dim, eps):
    # x_ref: (B, L, D)   wc_ref: (D, 2H)  (feature-mean-centered encoder weight)
    # bc_ref/g_ref/be_ref: (1, 2H)        o_ref: (B, L, 2H)
    B, L, D = x_ref.shape
    H2 = 2 * hidden_dim

    x3 = x_ref[...]                                                   # [B, L, D]

    # nonzero_vectors_mask = ~all(|x| < 1e-6, dim=-1)
    mask = jnp.max(jnp.abs(x3), axis=-1, keepdims=True) >= 1e-6       # [B, L, 1] bool

    # Encoder + LayerNorm mean-centering folded into (Wc, bc):
    #   d = (x @ W + b) - mean_feat(x @ W + b) == x @ Wc + bc
    # One MXU matmul per block, at the duplicated 2H lane width.
    x2 = x3.reshape(B * L, D)                                         # layout-free fold (L % 8 == 0)
    d = jnp.dot(x2, wc_ref[...], preferred_element_type=jnp.float32)  # [B*L, 2H]
    d = d + bc_ref[...]

    # Remaining LayerNorm (biased variance, eps=1e-5) + affine, then ReLU.
    # Lanes hold two identical copies of the H features, so reducing over the
    # duplicated 2H equals reducing each copy over H.
    var = jnp.mean(d * d, axis=-1, keepdims=True)
    y = d * jax.lax.rsqrt(var + eps) * g_ref[...] + be_ref[...]
    y = jnp.maximum(y, 0.0)                                           # ReLU

    # Per-polyline max over nodes (AdaptiveMaxPool1d(1)); all-zero rows -> -inf first.
    y3 = y.reshape(B, L, H2)                                          # layout-free unfold
    y3 = jnp.where(mask, y3, -jnp.inf)
    agg = jnp.max(y3, axis=1, keepdims=True)                          # [B, 1, 2H]

    # concat(features, aggregate) along the last axis == lane select between the two
    # duplicated halves (selector is a single (1, 1, 2H) vreg, broadcast by the select);
    # then zero all-zero input vectors (in f32, before any downcast).
    lane = jax.lax.broadcasted_iota(jnp.int32, (1, 1, H2), 2)
    out = jnp.where(lane >= hidden_dim, agg, y3)                      # agg broadcasts over L
    out = jnp.where(mask, out, 0.0)
    o_ref[...] = out.astype(o_ref.dtype)                              # single full-tile store


def polyline_subgraph_layer(x, w, b, gamma, beta, *, block_polylines=512,
                            out_dtype=jnp.float32):
    """x: [N, P, L, D] -> [N, P, L, 2H]"""
    N, P, L, D = x.shape
    H = w.shape[1]
    H2 = 2 * H
    NP = N * P

    xf = x.reshape(NP, L, D).astype(jnp.float32)

    # Pad the node axis to the 8-sublane granule (zero rows are masked out in-kernel).
    Lp = -(-L // 8) * 8
    if Lp != L:
        xf = jnp.pad(xf, ((0, 0), (0, Lp - L), (0, 0)))

    # Batch B polylines per grid step; pad NP to a multiple of the block.
    B = max(1, min(block_polylines, NP))
    NPp = -(-NP // B) * B
    if NPp != NP:
        xf = jnp.pad(xf, ((0, NPp - NP), (0, 0), (0, 0)))

    # Fold LayerNorm mean-centering into the encoder params (done once, O(D*H)),
    # then duplicate along the feature axis -> kernel runs at 2H lane width.
    f32 = jnp.float32
    wf = w.astype(f32)
    bf = b.astype(f32)
    wc = wf - jnp.mean(wf, axis=1, keepdims=True)                     # center over features
    bc = bf - jnp.mean(bf)
    wc2 = jnp.concatenate([wc, wc], axis=1)                           # (D, 2H)
    bc2 = jnp.concatenate([bc, bc]).reshape(1, H2)
    g2 = jnp.concatenate([gamma, gamma]).reshape(1, H2).astype(f32)
    be2 = jnp.concatenate([beta, beta]).reshape(1, H2).astype(f32)

    kernel = functools.partial(_polyline_kernel, hidden_dim=H, eps=1e-5)

    out_bytes = jnp.dtype(out_dtype).itemsize
    cost = pl.CostEstimate(
        flops=2 * NPp * Lp * D * H2,
        transcendentals=NPp * Lp,                                     # one rsqrt per node
        bytes_accessed=NPp * Lp * (D * 4 + H2 * out_bytes) + (D + 3) * H2 * 4,
    )

    out = pl.pallas_call(
        kernel,
        out_shape=jax.ShapeDtypeStruct((NPp, Lp, H2), out_dtype),
        grid_spec=pltpu.PrefetchScalarGridSpec(
            num_scalar_prefetch=0,
            grid=(NPp // B,),
            in_specs=[
                pl.BlockSpec((B, Lp, D), lambda i: (i, 0, 0)),        # B polylines / step
                pl.BlockSpec((D, H2), lambda i: (0, 0)),              # centered+dup weight (resident)
                pl.BlockSpec((1, H2), lambda i: (0, 0)),              # centered+dup bias
                pl.BlockSpec((1, H2), lambda i: (0, 0)),              # duplicated LN gamma
                pl.BlockSpec((1, H2), lambda i: (0, 0)),              # duplicated LN beta
            ],
            out_specs=pl.BlockSpec((B, Lp, H2), lambda i: (i, 0, 0)),
        ),
        compiler_params=pltpu.CompilerParams(
            dimension_semantics=("parallel",)),
        cost_estimate=cost,
    )(xf, wc2, bc2, g2, be2)

    out = out[:NP, :L]
    return out.reshape(N, P, L, H2)


def reference(x, w, b, gamma, beta):
    """Pure-JAX transcription of the PyTorch forward for verification."""
    mask = jnp.any(jnp.abs(x) >= 1e-6, axis=-1, keepdims=True)
    z = x @ w + b
    mu = z.mean(-1, keepdims=True)
    var = ((z - mu) ** 2).mean(-1, keepdims=True)
    y = (z - mu) / jnp.sqrt(var + 1e-5) * gamma + beta
    y = jnp.maximum(y, 0.0)
    y = jnp.where(mask, y, -jnp.inf)
    agg = jnp.max(y, axis=2, keepdims=True)            # max over nodes within each polyline
    out = jnp.concatenate([y, jnp.broadcast_to(agg, y.shape)], axis=-1)
    out = jnp.where(mask, out, 0.0)
    return out


if __name__ == "__main__":
    # Small shapes consistent with the module: input_node_dim=6, hidden_layer_dim=32.
    N, P, L, D, H = 2, 4, 8, 6, 32

    key = jax.random.PRNGKey(0)
    kx, kw, kb = jax.random.split(key, 3)

    # Deterministic parameter init (matching __init__ shapes / init style):
    #   encoder.weight: xavier_uniform, encoder.bias: U(-1/sqrt(D), 1/sqrt(D))
    #   layer_norm: weight=1, bias=0
    xav = (6.0 / (D + H)) ** 0.5
    w = jax.random.uniform(kw, (D, H), jnp.float32, -xav, xav)
    b = jax.random.uniform(kb, (H,), jnp.float32, -1.0 / D ** 0.5, 1.0 / D ** 0.5)
    gamma = jnp.ones((H,), jnp.float32)
    beta = jnp.zeros((H,), jnp.float32)

    # Inputs with some exactly-zero padding vectors to exercise the mask path.
    x = jax.random.normal(kx, (N, P, L, D), jnp.float32)
    node_idx = jnp.arange(L)[None, None, :, None]
    valid_len = jnp.array([[8, 5, 3, 8], [6, 8, 2, 4]])[:, :, None, None]
    x = jnp.where(node_idx < valid_len, x, 0.0)

    out = polyline_subgraph_layer(x, w, b, gamma, beta)
    out = jax.block_until_ready(out)
    ref = reference(x, w, b, gamma, beta)
    assert out.shape == (N, P, L, 2 * H), out.shape
    assert jnp.allclose(out, ref, atol=1e-5, rtol=1e-5), (
        float(jnp.max(jnp.abs(out - ref))))

    # Second check: odd polyline count + tiny block size to exercise the NP-padding
    # path and a multi-step (pipelined) grid.
    x_odd = x[:, :3]
    out2 = polyline_subgraph_layer(x_odd, w, b, gamma, beta, block_polylines=4)
    out2 = jax.block_until_ready(out2)
    ref2 = reference(x_odd, w, b, gamma, beta)
    assert out2.shape == (N, 3, L, 2 * H), out2.shape
    assert jnp.allclose(out2, ref2, atol=1e-5, rtol=1e-5), (
        float(jnp.max(jnp.abs(out2 - ref2))))

    print("KERNEL_OK")
</pallas_src>

<mosaic_0001>
module attributes {stable_mosaic.version = 11 : i64} {
  func.func @_polyline_kernel(%arg0: i32, %arg1: memref<8x8x6xf32, #tpu.memory_space<vmem>>, %arg2: memref<6x64xf32, #tpu.memory_space<vmem>>, %arg3: memref<1x64xf32, #tpu.memory_space<vmem>>, %arg4: memref<1x64xf32, #tpu.memory_space<vmem>>, %arg5: memref<1x64xf32, #tpu.memory_space<vmem>>, %arg6: memref<8x8x64xf32, #tpu.memory_space<vmem>>) attributes {dimension_semantics = [#tpu.dimension_semantics<parallel>], iteration_bounds = array<i64: 1>, scalar_prefetch = 0 : i64, scratch_operands = 0 : i64, tpu.core_type = #tpu.core_type<tc>, window_params = [{transform_indices = @transform_0, window_bounds = array<i64: 8, 8, 6>}, {pipeline_mode = #tpu.pipeline_mode<synchronous>, transform_indices = @transform_1, window_bounds = array<i64: 6, 64>}, {pipeline_mode = #tpu.pipeline_mode<synchronous>, transform_indices = @transform_2, window_bounds = array<i64: 1, 64>}, {pipeline_mode = #tpu.pipeline_mode<synchronous>, transform_indices = @transform_3, window_bounds = array<i64: 1, 64>}, {pipeline_mode = #tpu.pipeline_mode<synchronous>, transform_indices = @transform_4, window_bounds = array<i64: 1, 64>}, {transform_indices = @transform_5, window_bounds = array<i64: 8, 8, 64>}]} {
    %c0 = arith.constant 0 : index
    %c0_0 = arith.constant 0 : index
    %c0_1 = arith.constant 0 : index
    %0 = vector.load %arg1[%c0, %c0_0, %c0_1] : memref<8x8x6xf32, #tpu.memory_space<vmem>>, vector<8x8x6xf32>
    %1 = math.absf %0 : vector<8x8x6xf32>
    %cst = arith.constant dense<0xFF800000> : vector<8x8xf32>
    %2 = vector.multi_reduction <maximumf>, %1, %cst [2] : vector<8x8x6xf32> to vector<8x8xf32>
    %3 = vector.shape_cast %2 : vector<8x8xf32> to vector<8x8x1xf32>
    %cst_2 = arith.constant 9.99999997E-7 : f32
    %4 = vector.broadcast %cst_2 : f32 to vector<8x8x1xf32>
    %5 = arith.cmpf oge, %3, %4 : vector<8x8x1xf32>
    %6 = vector.shape_cast %0 : vector<8x8x6xf32> to vector<64x6xf32>
    %c0_3 = arith.constant 0 : index
    %c0_4 = arith.constant 0 : index
    %7 = vector.load %arg2[%c0_3, %c0_4] : memref<6x64xf32, #tpu.memory_space<vmem>>, vector<6x64xf32>
    %cst_5 = arith.constant dense<0.000000e+00> : vector<64x64xf32>
    %8 = tpu.matmul %6, %7, %cst_5 {dimension_numbers = #tpu.dot_dimension_numbers<[1], [0], [0], [1], [0, 0, 1, 1], [], []>} : vector<64x6xf32>, vector<6x64xf32>, vector<64x64xf32> -> vector<64x64xf32>
    %c0_6 = arith.constant 0 : index
    %c0_7 = arith.constant 0 : index
    %9 = vector.load %arg3[%c0_6, %c0_7] : memref<1x64xf32, #tpu.memory_space<vmem>>, vector<1x64xf32>
    %10 = vector.broadcast %9 : vector<1x64xf32> to vector<64x64xf32>
    %11 = arith.addf %8, %10 : vector<64x64xf32>
    %12 = arith.mulf %11, %11 : vector<64x64xf32>
    %cst_8 = arith.constant dense<0.000000e+00> : vector<64xf32>
    %13 = vector.multi_reduction <add>, %12, %cst_8 [1] : vector<64x64xf32> to vector<64xf32>
    %14 = vector.shape_cast %13 : vector<64xf32> to vector<64x1xf32>
    %cst_9 = arith.constant 6.400000e+01 : f32
    %15 = vector.broadcast %cst_9 : f32 to vector<64x1xf32>
    %16 = arith.divf %14, %15 : vector<64x1xf32>
    %cst_10 = arith.constant 9.99999974E-6 : f32
    %17 = vector.broadcast %cst_10 : f32 to vector<64x1xf32>
    %18 = arith.addf %16, %17 : vector<64x1xf32>
    %19 = math.rsqrt %18 : vector<64x1xf32>
    %20 = vector.broadcast %19 : vector<64x1xf32> to vector<64x64xf32>
    %21 = arith.mulf %11, %20 : vector<64x64xf32>
    %c0_11 = arith.constant 0 : index
    %c0_12 = arith.constant 0 : index
    %22 = vector.load %arg4[%c0_11, %c0_12] : memref<1x64xf32, #tpu.memory_space<vmem>>, vector<1x64xf32>
    %23 = vector.broadcast %22 : vector<1x64xf32> to vector<64x64xf32>
    %24 = arith.mulf %21, %23 : vector<64x64xf32>
    %c0_13 = arith.constant 0 : index
    %c0_14 = arith.constant 0 : index
    %25 = vector.load %arg5[%c0_13, %c0_14] : memref<1x64xf32, #tpu.memory_space<vmem>>, vector<1x64xf32>
    %26 = vector.broadcast %25 : vector<1x64xf32> to vector<64x64xf32>
    %27 = arith.addf %24, %26 : vector<64x64xf32>
    %cst_15 = arith.constant 0.000000e+00 : f32
    %28 = vector.broadcast %cst_15 : f32 to vector<64x64xf32>
    %29 = arith.maximumf %27, %28 : vector<64x64xf32>
    %30 = vector.shape_cast %29 : vector<64x64xf32> to vector<8x8x64xf32>
    %cst_16 = arith.constant 0xFF800000 : f32
    %31 = vector.shape_cast %5 : vector<8x8x1xi1> to vector<8x8x1xi1>
    %32 = vector.broadcast %31 : vector<8x8x1xi1> to vector<8x8x64xi1>
    %33 = vector.broadcast %cst_16 : f32 to vector<8x8x64xf32>
    %34 = arith.select %32, %30, %33 : vector<8x8x64xi1>, vector<8x8x64xf32>
    %cst_17 = arith.constant dense<0xFF800000> : vector<8x64xf32>
    %35 = vector.multi_reduction <maximumf>, %34, %cst_17 [1] : vector<8x8x64xf32> to vector<8x64xf32>
    %36 = vector.shape_cast %35 : vector<8x64xf32> to vector<8x1x64xf32>
    %37 = tpu.iota {dimensions = array<i32: 2>} : vector<1x1x64xi32>
    %c32_i32 = arith.constant 32 : i32
    %38 = vector.broadcast %c32_i32 : i32 to vector<1x1x64xi32>
    %39 = arith.cmpi sge, %37, %38 : vector<1x1x64xi32>
    %40 = vector.shape_cast %39 : vector<1x1x64xi1> to vector<1x1x64xi1>
    %41 = vector.broadcast %40 : vector<1x1x64xi1> to vector<8x8x64xi1>
    %42 = vector.shape_cast %36 : vector<8x1x64xf32> to vector<8x1x64xf32>
    %43 = vector.broadcast %42 : vector<8x1x64xf32> to vector<8x8x64xf32>
    %44 = arith.select %41, %43, %34 : vector<8x8x64xi1>, vector<8x8x64xf32>
    %cst_18 = arith.constant 0.000000e+00 : f32
    %45 = vector.shape_cast %5 : vector<8x8x1xi1> to vector<8x8x1xi1>
    %46 = vector.broadcast %45 : vector<8x8x1xi1> to vector<8x8x64xi1>
    %47 = vector.broadcast %cst_18 : f32 to vector<8x8x64xf32>
    %48 = arith.select %46, %44, %47 : vector<8x8x64xi1>, vector<8x8x64xf32>
    %c0_19 = arith.constant 0 : index
    %c0_20 = arith.constant 0 : index
    %c0_21 = arith.constant 0 : index
    %49 = vector.load %arg6[%c0_19, %c0_20, %c0_21] : memref<8x8x64xf32, #tpu.memory_space<vmem>>, vector<8x8x64xf32>
    tpu.vector_store %arg6[%c0_19, %c0_20, %c0_21], %48 {strides = array<i32>} : memref<8x8x64xf32, #tpu.memory_space<vmem>>, vector<8x8x64xf32>,
    return
  }
  func.func @transform_0(%arg0: i32) -> (i32, i32, i32) {
    %c0_i32 = arith.constant 0 : i32
    %c0_i32_0 = arith.constant 0 : i32
    %c0_i32_1 = arith.constant 0 : i32
    return %arg0, %c0_i32, %c0_i32_0 : i32, i32, i32
  }
  func.func @transform_1(%arg0: i32) -> (i32, i32) {
    %c0_i32 = arith.constant 0 : i32
    %c0_i32_0 = arith.constant 0 : i32
    %c0_i32_1 = arith.constant 0 : i32
    return %c0_i32, %c0_i32_0 : i32, i32
  }
  func.func @transform_2(%arg0: i32) -> (i32, i32) {
    %c0_i32 = arith.constant 0 : i32
    %c0_i32_0 = arith.constant 0 : i32
    %c0_i32_1 = arith.constant 0 : i32
    return %c0_i32, %c0_i32_0 : i32, i32
  }
  func.func @transform_3(%arg0: i32) -> (i32, i32) {
    %c0_i32 = arith.constant 0 : i32
    %c0_i32_0 = arith.constant 0 : i32
    %c0_i32_1 = arith.constant 0 : i32
    return %c0_i32, %c0_i32_0 : i32, i32
  }
  func.func @transform_4(%arg0: i32) -> (i32, i32) {
    %c0_i32 = arith.constant 0 : i32
    %c0_i32_0 = arith.constant 0 : i32
    %c0_i32_1 = arith.constant 0 : i32
    return %c0_i32, %c0_i32_0 : i32, i32
  }
  func.func @transform_5(%arg0: i32) -> (i32, i32, i32) {
    %c0_i32 = arith.constant 0 : i32
    %c0_i32_0 = arith.constant 0 : i32
    %c0_i32_1 = arith.constant 0 : i32
    return %arg0, %c0_i32, %c0_i32_0 : i32, i32, i32
  }
}

</mosaic_0001>

<bundles_post_ra>
// kernel: tpu_custom_call.1
= control target key start
LH: loop header
LB: loop body
LE: loop exit
PB: predicated region body
PF: predicated region fallthrough
CT: control target
= control target key end

     0   :  { %vm102_vm0 = vcmask 1045504   ;;  %vm37_vm1 = vcmask 48128   ;;  %s795_s0 = inlined_call_operand.vmem [shape: f32[8,8,6], index: 0, kind: input, shape index: {}]   ;;  %s796_s1 = inlined_call_operand.vmem [shape: f32[6,64], index: 1, kind: input, shape index: {}]   ;;  %s797_s2 = inlined_call_operand.vmem [shape: f32[1,64], index: 2, kind: input, shape index: {}]   ;;  %s798_s3 = inlined_call_operand.vmem [shape: f32[1,64], index: 3, kind: input, shape index: {}]   ;;  %s799_s4 = inlined_call_operand.vmem [shape: f32[1,64], index: 4, kind: input, shape index: {}]   ;;  %s800_s5 = inlined_call_operand.hbm [shape: f32[8,8,64], index: 5, kind: output, shape index: {}]  }
   0x1   :  { %v70_v0 = vld [vmem:[%s796_s1] sm:$0x3f]  ;;  %v22_v3 = vld [vmem:[%s795_s0 + $0x8] sm:$0xff]  ;;  %v577_v5 = vld [vmem:[%s795_s0 + $0x10] sm:$0xff] }
   0x2   :  { %v559_v1 = vld [vmem:[%s795_s0] sm:$0xff]  ;;  %461 = vmatprep.subr.msk.mxu0 %vm102_vm0, %v70_v0  ;;  %475 = vmatprep.subr.msk.mxu1 %vm102_vm0, %v70_v0  ;;  %v572_v4 = vld [vmem:[%s795_s0 + $0x28] sm:$0xff]  ;;  %v582_v6 = vld [vmem:[%s795_s0 + $0x30] sm:$0xff] }
   0x3   :  { %v564_v2 = vld [vmem:[%s795_s0 + $0x20] sm:$0xff]  ;;  %462 = vmatpush3.msk.msra.mxu0 %vm102_vm0, %v70_v0  ;;  %476 = vmatpush3.msk.msra.mxu1 %vm102_vm0, %v70_v0 }
   0x4   :  { %463 = vmatprep.mubr.msk.f32.mxu0 %vm37_vm1, %v559_v1  ;;  %469 = vmatprep.mubr.msk.f32.mxu1 %vm37_vm1, %v564_v2 }
   0x5   :  { %10 = vsyncpa [#allocation3], 0  ;;  %464 = vmatmul.mubr.msk.f32.vlgmr.msra.gmra.mrb[0].mxu0 %vm37_vm1, %v22_v3  ;;  %470 = vmatmul.mubr.msk.f32.vlgmr.msra.gmra.mrb[0].mxu1 %vm37_vm1, %v572_v4  ;;  %v24_v7 = vld [vmem:[%s795_s0 + $0x18] sm:$0xff]  ;;  %v440_v9 = vld [vmem:[%s797_s2] ss:$0 sm:$0xff]  ;;  %vm219_vm2 = vcmask 523264  }
   0x6   :  { %466 = vmatprep.mubr.msk.f32.mxu0 %vm37_vm1, %v577_v5  ;;  %472 = vmatprep.mubr.msk.f32.mxu1 %vm37_vm1, %v582_v6  ;;  %v601_v8 = vld [vmem:[%s795_s0 + $0x38] sm:$0xff]  ;;  %v29_v40 = vand.u32 2147483647, %v559_v1  ;;  %v30_v43 = vand.u32 2147483647, %v22_v3 }
   0x7   :  { %v32_v45 = vand.u32 2147483647, %v24_v7  ;;  %v31_v47 = vand.u32 2147483647, %v577_v5  ;;  %v33_v48 = vand.u32 2147483647, %v564_v2 }
   0x8   :  { %v41_v44 = vsel %vm37_vm1, %v30_v43, -inf  ;;  %v38_v46 = vsel %vm37_vm1, %v29_v40, -inf  ;;  %v34_v50 = vand.u32 2147483647, %v572_v4  ;;  %v36_v54 = vand.u32 2147483647, %v601_v8 }
   0x9   :  { %467 = vmatmul.mubr.msk.f32.gmra.mrb[2].mxu0 %vm37_vm1, %v24_v7  ;;  %473 = vmatmul.mubr.msk.f32.gmra.mrb[2].mxu1 %vm37_vm1, %v601_v8  ;;  %v47_v49 = vsel %vm37_vm1, %v32_v45, -inf  ;;  %v44_v51 = vsel %vm37_vm1, %v31_v47, -inf  ;;  %v50_v53 = vsel %vm37_vm1, %v33_v48, -inf  ;;  %v35_v55 = vand.u32 2147483647, %v582_v6 }
   0xa   :  { %v53_v52 = vsel %vm37_vm1, %v34_v50, -inf  ;;  %v59_v56 = vsel %vm37_vm1, %v36_v54, -inf }
   0xb   :  { %v56_v57 = vsel %vm37_vm1, %v35_v55, -inf }
  0xd8   :  { %v465_v10 = vpop.f32.mrb[0].mxu0  ;;  %v471_v11 = vpop.f32.mrb[0].mxu1 }
  0xd9   :  { %v609_v12 = vadd.f32 %v465_v10, %v440_v9  ;;  %v611_v13 = vadd.f32 %v471_v11, %v440_v9  ;;  %v172_v14 = vpop.f32.mrb[1].mxu0  ;;  %v192_v15 = vpop.f32.mrb[1].mxu1 }
  0xda   :  { %v613_v16 = vadd.f32 %v440_v9, %v172_v14  ;;  %v619_v19 = vadd.f32 %v440_v9, %v192_v15 }
  0xdb   :  { %v216_v17 = vmul.f32 %v611_v13, %v611_v13  ;;  %v212_v18 = vmul.f32 %v609_v12, %v609_v12 }
  0xdc   :  { %v468_v20 = vpop.f32.mrb[2].mxu0  ;;  %v474_v21 = vpop.f32.mrb[2].mxu1  ;;  %v211_v26 = vmul.f32 %v613_v16, %v613_v16  ;;  %v215_v35 = vmul.f32 %v619_v19, %v619_v19 }
  0xdd   :  { %v621_v22 = vadd.f32 %v468_v20, %v440_v9  ;;  %v182_v23 = vpop.f32.mrb[3].mxu0  ;;  %v235_v24 = vsel %vm219_vm2, %v216_v17, 0.0  ;;  %v223_v25 = vsel %vm219_vm2, %v212_v18, 0.0  ;;  %v202_v27 = vpop.f32.mrb[3].mxu1  ;;  %v629_v29 = vadd.f32 %v474_v21, %v440_v9 }
  0xde   :  { %v627_v28 = vadd.f32 %v440_v9, %v182_v23  ;;  %236 = vadd.xlane.f32.xlu1 %v235_v24  ;;  %224 = vadd.xlane.f32.xlu0 %v223_v25  ;;  %v633_v31 = vadd.f32 %v440_v9, %v202_v27  ;;  %v220_v33 = vsel %vm219_vm2, %v211_v26, 0.0  ;;  %v232_v39 = vsel %vm219_vm2, %v215_v35, 0.0  ;;  %v666_v23 = vld [vmem:[%s798_s3] ss:$0 sm:$0xff]  ;;  %s520_s3 = smov [#allocation2]  }
  0xdf   :  { %v214_v30 = vmul.f32 %v621_v22, %v621_v22  ;;  %v218_v36 = vmul.f32 %v629_v29, %v629_v29 }
  0xe0   :  { %v213_v34 = vmul.f32 %v627_v28, %v627_v28  ;;  %v217_v37 = vmul.f32 %v633_v31, %v633_v31 }
  0xe1   :  { %v229_v32 = vsel %vm219_vm2, %v214_v30, 0.0  ;;  %v241_v41 = vsel %vm219_vm2, %v218_v36, 0.0 }
  0xe2   :  { %230 = vadd.xlane.f32.xlu1 %v229_v32  ;;  %221 = vadd.xlane.f32.xlu0 %v220_v33  ;;  %v226_v38 = vsel %vm219_vm2, %v213_v34, 0.0  ;;  %v238_v42 = vsel %vm219_vm2, %v217_v37, 0.0  ;;  %v677_v32 = vld [vmem:[%s799_s4] ss:$0 sm:$0xff]  ;;  %v395_v33 = vlaneseq  ;;  %s429_s4 = sshll.u32 %s520_s3, 4  ;;  %s430_s4 = int_to_ptr.vmem [resolvable:$true] %s429_s4 }
  0xe3   :  { %s496_s14 = scalar_lea.vmem %s430_s4, 1024  ;;  %p501_p1 = scmp.lt.s32.totalorder %s430_s4, %s430_s4 }
  0xe4   :  { %v689_v43 = vand.u32 127, %v395_v33  ;;  %p497_p0 = scmp.ne.s32.totalorder %s430_s4, %s496_s14  ;;  %p502_p2 = scmp.lt.s32.totalorder %s496_s14, %s496_s14 }
  0xe6   :  { %227 = vadd.xlane.f32.xlu1 %v226_v38  ;;  %233 = vadd.xlane.f32.xlu0 %v232_v39  ;;  %vm397_vm8 = vcmp.ge.s32.totalorder %v689_v43, 32  ;;  %p503_p3 = por %p502_p2, %p501_p1 }
  0xe8   :  { %p504_p4 = pnand %p503_p3, %p497_p0 }
  0xea   :  { %242 = vadd.xlane.f32.xlu1 %v241_v41  ;;  %239 = vadd.xlane.f32.xlu0 %v238_v42 }
  0xee   :  { %42 = vmax.xlane.f32.xlu1 %v41_v44  ;;  %39 = vmax.xlane.f32.xlu0 %v38_v46 }
  0xf2   :  { %48 = vmax.xlane.f32.xlu1 %v47_v49  ;;  %45 = vmax.xlane.f32.xlu0 %v44_v51 }
  0xf6   :  { %54 = vmax.xlane.f32.xlu1 %v53_v52  ;;  %51 = vmax.xlane.f32.xlu0 %v50_v53 }
  0xfa   :  { %60 = vmax.xlane.f32.xlu1 %v59_v56  ;;  %57 = vmax.xlane.f32.xlu0 %v56_v57 }
 0x16b   :  { %v237_v58 = vpop.xlane.xlu1 %236  ;;  %v225_v59 = vpop.xlane.xlu0 %224 }
 0x16c   :  { %v250_v60 = vmul.f32 0.015625, %v237_v58  ;;  %v246_v61 = vmul.f32 0.015625, %v225_v59 }
 0x16e   :  { %v258_v62 = vadd.f32 1e-05, %v250_v60  ;;  %v254_v63 = vadd.f32 1e-05, %v246_v61 }
 0x16f   :  { %v231_v0 = vpop.xlane.xlu1 %230  ;;  %v222_v1 = vpop.xlane.xlu0 %221 }
 0x170   :  { %480 = vrsqrt.f32 %v258_v62  ;;  %v248_v2 = vmul.f32 0.015625, %v231_v0  ;;  %v245_v3 = vmul.f32 0.015625, %v222_v1 }
 0x171   :  { %482 = vrsqrt.f32 %v254_v63 }
 0x172   :  { %v256_v4 = vadd.f32 1e-05, %v248_v2  ;;  %v253_v5 = vadd.f32 1e-05, %v245_v3 }
 0x173   :  { %v228_v6 = vpop.xlane.xlu1 %227  ;;  %v234_v7 = vpop.xlane.xlu0 %233 }
 0x174   :  { %484 = vrsqrt.f32 %v256_v4  ;;  %v247_v8 = vmul.f32 0.015625, %v228_v6  ;;  %v249_v9 = vmul.f32 0.015625, %v234_v7 }
 0x175   :  { %486 = vrsqrt.f32 %v253_v5 }
 0x176   :  { %v255_v10 = vadd.f32 1e-05, %v247_v8  ;;  %v257_v11 = vadd.f32 1e-05, %v249_v9 }
 0x177   :  { %v243_v14 = vpop.xlane.xlu1 %242  ;;  %v240_v15 = vpop.xlane.xlu0 %239 }
 0x178   :  { %488 = vrsqrt.f32 %v255_v10  ;;  %v252_v17 = vmul.f32 0.015625, %v243_v14  ;;  %v251_v21 = vmul.f32 0.015625, %v240_v15 }
 0x179   :  { %490 = vrsqrt.f32 %v257_v11 }
 0x17a   :  { %v481_v18 = vpop.eup %480  ;;  %v260_v20 = vadd.f32 1e-05, %v252_v17  ;;  %v259_v36 = vadd.f32 1e-05, %v251_v21 }
 0x17b   :  { %v483_v24 = vpop.eup %482  ;;  %v668_v25 = vpop.xlane.xlu1 %42  ;;  %v274_v27 = vmul.f32 %v481_v18, %v611_v13 }
 0x17c   :  { %v670_v26 = vpop.xlane.xlu0 %39  ;;  %v270_v30 = vmul.f32 %v483_v24, %v609_v12  ;;  %492 = vrsqrt.f32 %v260_v20  ;;  %vm63_vm3 = vcmp.ge.f32.partialorder %v668_v25, 1e-06 }
 0x17d   :  { %v289_v34 = vmul.f32 %v666_v23, %v274_v27  ;;  %vm62_vm4 = vcmp.ge.f32.partialorder %v670_v26, 1e-06  ;;  %494 = vrsqrt.f32 %v259_v36 }
 0x17e   :  { %v485_v35 = vpop.eup %484  ;;  %v285_v37 = vmul.f32 %v666_v23, %v270_v30 }
 0x17f   :  { %v487_v38 = vpop.eup %486  ;;  %v272_v39 = vmul.f32 %v485_v35, %v621_v22  ;;  %v682_v40 = vpop.xlane.xlu1 %48  ;;  %v304_v12 = vadd.f32 %v677_v32, %v289_v34 }
 0x180   :  { %v685_v13 = vpop.xlane.xlu0 %45  ;;  %v300_v41 = vadd.f32 %v677_v32, %v285_v37  ;;  %v269_v42 = vmul.f32 %v487_v38, %v613_v16  ;;  %vm65_vm5 = vcmp.ge.f32.partialorder %v682_v40, 1e-06 }
 0x181   :  { %v287_v44 = vmul.f32 %v666_v23, %v272_v39  ;;  %v312_v49 = vmax.f32 %v304_v12, 0.0  ;;  %vm64_vm6 = vcmp.ge.f32.partialorder %v685_v13, 1e-06 }
 0x182   :  { %v489_v45 = vpop.eup %488  ;;  %v308_v22 = vmax.f32 %v300_v41, 0.0  ;;  %v284_v46 = vmul.f32 %v666_v23, %v269_v42 }
 0x183   :  { %v491_v47 = vpop.eup %490  ;;  %v302_v48 = vadd.f32 %v677_v32, %v287_v44  ;;  %v697_v16 = vpop.xlane.xlu1 %54  ;;  %v271_v50 = vmul.f32 %v489_v45, %v627_v28 }
 0x184   :  { %v332_v51 = vsel %vm63_vm3, %v308_v22, -inf  ;;  %v299_v52 = vadd.f32 %v677_v32, %v284_v46  ;;  %vm67_vm7 = vcmp.ge.f32.partialorder %v697_v16, 1e-06  ;;  %v273_v53 = vmul.f32 %v491_v47, %v619_v19  ;;  %v706_v54 = vpop.xlane.xlu0 %51 }
 0x185   :  { %v346_v55 = vsel %vm219_vm2, %v332_v51, -inf  ;;  %v310_v56 = vmax.f32 %v302_v48, 0.0  ;;  %v336_v57 = vsel %vm67_vm7, %v312_v49, -inf  ;;  %v286_v28 = vmul.f32 %v666_v23, %v271_v50 }
 0x186   :  { %v347_v58 = vrot.slane %v346_v55, 4  ;;  %v307_v59 = vmax.f32 %v299_v52, 0.0  ;;  %v374_v60 = vsel %vm219_vm2, %v336_v57, -inf  ;;  %v288_v61 = vmul.f32 %v666_v23, %v273_v53  ;;  %v493_v62 = vpop.eup %492 }
 0x187   :  { %v334_v19 = vsel %vm65_vm5, %v310_v56, -inf  ;;  %v375_v63 = vrot.slane %v374_v60, 4  ;;  %v301_v0 = vadd.f32 %v677_v32, %v286_v28  ;;  %vm66_vm9 = vcmp.ge.f32.partialorder %v706_v54, 1e-06  ;;  %v723_v5 = vpop.xlane.xlu1 %60  ;;  %v495_v21 = vpop.eup %494 }
 0x188   :  { %v348_v1 = vmax.f32 %v346_v55, %v347_v58  ;;  %v360_v2 = vsel %vm219_vm2, %v334_v19, -inf  ;;  %v331_v3 = vsel %vm62_vm4, %v307_v59, -inf  ;;  %v303_v4 = vadd.f32 %v677_v32, %v288_v61 }
 0x189   :  { %v361_v6 = vrot.slane %v360_v2, 4  ;;  %v339_v7 = vsel %vm219_vm2, %v331_v3, -inf  ;;  %v376_v8 = vmax.f32 %v374_v60, %v375_v63  ;;  %v309_v9 = vmax.f32 %v301_v0, 0.0  ;;  %v58_v0 = vpop.xlane.xlu0 %57 }
 0x18a   :  { %v349_v10 = vrot.slane %v348_v1, 2  ;;  %v340_v11 = vrot.slane %v339_v7, 4  ;;  %v311_v14 = vmax.f32 %v303_v4, 0.0  ;;  %v276_v15 = vmul.f32 %v493_v62, %v629_v29 }
 0x18b   :  { %v362_v17 = vmax.f32 %v360_v2, %v361_v6  ;;  %v377_v18 = vrot.slane %v376_v8, 2  ;;  %v333_v20 = vsel %vm64_vm6, %v309_v9, -inf  ;;  %vm69_vm10 = vcmp.ge.f32.partialorder %v723_v5, 1e-06 }
 0x18c   :  { %v350_v24 = vmax.f32 %v348_v1, %v349_v10  ;;  %v341_v27 = vmax.f32 %v339_v7, %v340_v11  ;;  %v353_v30 = vsel %vm219_vm2, %v333_v20, -inf  ;;  %v335_v33 = vsel %vm66_vm9, %v311_v14, -inf }
 0x18d   :  { %v363_v34 = vrot.slane %v362_v17, 2  ;;  %v378_v35 = vmax.f32 %v376_v8, %v377_v18  ;;  %v354_v36 = vrot.slane %v353_v30, 4  ;;  %v367_v29 = vsel %vm219_vm2, %v335_v33, -inf }
 0x18e   :  { %v351_v37 = vrot.slane %v350_v24, 1  ;;  %v342_v38 = vrot.slane %v341_v27, 2  ;;  %v368_v39 = vrot.slane %v367_v29, 4  ;;  %v291_v12 = vmul.f32 %v666_v23, %v276_v15 }
 0x18f   :  { %v364_v41 = vmax.f32 %v362_v17, %v363_v34  ;;  %v379_v42 = vrot.slane %v378_v35, 1  ;;  %v355_v44 = vmax.f32 %v353_v30, %v354_v36  ;;  %v275_v45 = vmul.f32 %v495_v21, %v633_v31 }
 0x190   :  { %v352_v22 = vmax.f32 %v350_v24, %v351_v37  ;;  %v343_v46 = vmax.f32 %v341_v27, %v342_v38  ;;  %v369_v47 = vmax.f32 %v367_v29, %v368_v39  ;;  %v306_v48 = vadd.f32 %v677_v32, %v291_v12 }
 0x191   :  { %v365_v49 = vrot.slane %v364_v41, 1  ;;  %v380_v50 = vmax.f32 %v378_v35, %v379_v42  ;;  %v356_v52 = vrot.slane %v355_v44, 2  ;;  %v290_v53 = vmul.f32 %v666_v23, %v275_v45 }
 0x192   :  { %v401_v55 = vsel %vm397_vm8, %v352_v22, %v332_v51  ;;  %v344_v56 = vrot.slane %v343_v46, 1  ;;  %v370_v28 = vrot.slane %v369_v47, 2  ;;  %v314_v58 = vmax.f32 %v306_v48, 0.0 }
 0x193   :  { %v409_v59 = vsel %vm63_vm3, %v401_v55, 0.0  ;;  %v366_v31 = vmax.f32 %v364_v41, %v365_v49  ;;  %v405_v60 = vsel %vm397_vm8, %v380_v50, %v336_v57  ;;  %v357_v61 = vmax.f32 %v355_v44, %v356_v52 }
 0x194   :  { %417 = vst.msk [vmem:[#allocation2 + $0x8] sm:$0xff] %vm219_vm2, %v409_v59  ;;  %v345_v62 = vmax.f32 %v343_v46, %v344_v56  ;;  %v413_v23 = vsel %vm67_vm7, %v405_v60, 0.0  ;;  %v371_v63 = vmax.f32 %v369_v47, %v370_v28  ;;  %v338_v51 = vsel %vm69_vm10, %v314_v58, -inf }
 0x195   :  { %v403_v25 = vsel %vm397_vm8, %v366_v31, %v334_v19  ;;  %421 = vst.msk [vmem:[#allocation2 + $0x28] sm:$0xff] %vm219_vm2, %v413_v23  ;;  %v358_v1 = vrot.slane %v357_v61, 1  ;;  %v388_v57 = vsel %vm219_vm2, %v338_v51, -inf  ;;  %v305_v2 = vadd.f32 %v677_v32, %v290_v53 }
 0x196   :  { %v411_v4 = vsel %vm65_vm5, %v403_v25, 0.0  ;;  %v400_v16 = vsel %vm397_vm8, %v345_v62, %v331_v3  ;;  %v372_v6 = vrot.slane %v371_v63, 1  ;;  %v389_v7 = vrot.slane %v388_v57, 4 }
 0x197   :  { %419 = vst.msk [vmem:[#allocation2 + $0x18] sm:$0xff] %vm219_vm2, %v411_v4  ;;  %v408_v19 = vsel %vm62_vm4, %v400_v16, 0.0  ;;  %v359_v8 = vmax.f32 %v357_v61, %v358_v1  ;;  %v313_v9 = vmax.f32 %v305_v2, 0.0  ;;  %vm68_vm11 = vcmp.ge.f32.partialorder %v58_v0, 1e-06 }
 0x198   :  { %416 = vst.msk [vmem:[#allocation2] sm:$0xff] %vm219_vm2, %v408_v19  ;;  %v373_v10 = vmax.f32 %v371_v63, %v372_v6  ;;  %v390_v32 = vmax.f32 %v388_v57, %v389_v7 }
 0x199   :  { %v402_v40 = vsel %vm397_vm8, %v359_v8, %v333_v20  ;;  %v337_v11 = vsel %vm68_vm11, %v313_v9, -inf }
 0x19a   :  { %v410_v3 = vsel %vm64_vm6, %v402_v40, 0.0  ;;  %v404_v14 = vsel %vm397_vm8, %v373_v10, %v335_v33  ;;  %v391_v26 = vrot.slane %v390_v32, 2  ;;  %v381_v15 = vsel %vm219_vm2, %v337_v11, -inf }
 0x19b   :  { %418 = vst.msk [vmem:[#allocation2 + $0x10] sm:$0xff] %vm219_vm2, %v410_v3  ;;  %v412_v17 = vsel %vm66_vm9, %v404_v14, 0.0  ;;  %v382_v18 = vrot.slane %v381_v15, 4 }
 0x19c   :  { %420 = vst.msk [vmem:[#allocation2 + $0x20] sm:$0xff] %vm219_vm2, %v412_v17  ;;  %v392_v20 = vmax.f32 %v390_v32, %v391_v26 }
 0x19d   :  { %v383_v21 = vmax.f32 %v381_v15, %v382_v18 }
 0x19e   :  { %v393_v24 = vrot.slane %v392_v20, 1 }
 0x19f   :  { %v384_v27 = vrot.slane %v383_v21, 2 }
 0x1a0   :  { %v394_v13 = vmax.f32 %v392_v20, %v393_v24 }
 0x1a1   :  { %v385_v30 = vmax.f32 %v383_v21, %v384_v27 }
 0x1a2   :  { %v407_v33 = vsel %vm397_vm8, %v394_v13, %v338_v51 }
 0x1a3   :  { %v415_v34 = vsel %vm69_vm10, %v407_v33, 0.0  ;;  %v386_v35 = vrot.slane %v385_v30, 1 }
 0x1a4   :  { %423 = vst.msk [vmem:[#allocation2 + $0x38] sm:$0xff] %vm219_vm2, %v415_v34 }
 0x1a5   :  { %v387_v54 = vmax.f32 %v385_v30, %v386_v35 }
 0x1a7   :  { %v406_v36 = vsel %vm397_vm8, %v387_v54, %v337_v11 }
 0x1a8   :  { %v414_v29 = vsel %vm68_vm11, %v406_v36, 0.0 }
 0x1a9   :  { %422 = vst.msk [vmem:[#allocation2 + $0x30] sm:$0xff] %vm219_vm2, %v414_v29 }
 0x1aa   :  { %507 = shalt.err (!%p504_p4)
}
 0x1ab   :  { %s508_s17 = scalar_lea.hbm %s800_s5, 1024 }
 0x1ac   :  { %p509_p5 = scmp.ne.s32.totalorder %s800_s5, %s508_s17  ;;  %p512_p6 = scmp.lt.u32.totalorder %s508_s17, %s800_s5 }
 0x1ae   :  { %p514_p7 = pnand %p512_p6, %p509_p5 }
 0x1b0   :  { %517 = shalt.err (!%p514_p7)
}
 0x1b1   :  { %s521_s22 = smov 128   ;;  %s522_s23 = smov 8  }
 0x1b2   :  { %435 = dma.vmem_to_hbm [thread:$0]  %s430_s4, 1024, %s800_s5, [#allocation3], %s521_s22, %s521_s22, %s522_s23  }
 0x1b3   :  { %518 = dma.done.wait [#allocation3], 1024  }
 0x1b4   :  { %519 = vsyncadd [#allocation3], 4294966272 }
 0x1b5   :  { %439 = vsyncpa [#allocation3], 1 }

</bundles_post_ra>
